<compile_context>
chip_gen: v5e
topology: v5e:2x2
jax: 0.10.0
libtpu: 0.0.40
codegen_flags: <defaults>
</compile_context>

<pallas_src>
import functools

import jax
import jax.numpy as jnp
from jax.experimental import pallas as pl
from jax.experimental.pallas import tpu as pltpu

LANES = 128
SUBLANES = 8
ALIGN = SUBLANES * LANES          # 1024-element alignment for the kernel prefix
NUM_CORES = 2                     # v7x TensorCore split; harmless on v5e/v6e


def _round_up(x, m):
    return ((x + m - 1) // m) * m


def _wmse_kernel(pred_ref, targ_ref, out_ref, *, threshold, high_weight,
                 rows, tile, spc, n_blocks):
    c = pl.program_id(0)          # "core" axis (parallel)
    i = pl.program_id(1)          # reduction steps within this core (arbitrary)
    blk = c * spc + i             # logical (unclamped) global block index

    @pl.when(i == 0)
    def _():
        out_ref[...] = jnp.zeros_like(out_ref)

    # Cast in-kernel; inputs stream through HBM in their original dtype.
    t = targ_ref[...].astype(jnp.float32)
    p = pred_ref[...].astype(jnp.float32)

    w = jnp.where(t > jnp.float32(threshold),
                  jnp.float32(high_weight), jnp.float32(1.0))
    d = p - t
    contrib = w * d * d                         # (tile, LANES) f32

    def fold(x):
        # Collapse the row tile onto one (8, 128) vreg with pure VPU adds;
        # the reshape matches the (8, 128) vreg tiling so it is layout-free.
        return x.reshape(tile // SUBLANES, SUBLANES, LANES).sum(axis=0)

    @pl.when(blk < n_blocks - 1)
    def _():
        # Steady state: full, fully-valid block -> no masking work at all.
        out_ref[...] += fold(contrib)

    @pl.when(blk >= n_blocks - 1)
    def _():
        # Last real block (possibly partial) and any clamped overhang block of
        # the second core: mask rows beyond the true row count (row-only
        # compare; no int32-overflow-prone flat element index needed).
        row = jax.lax.broadcasted_iota(jnp.int32, (tile, LANES), 0)
        valid = (blk * tile + row) < rows
        out_ref[...] += fold(jnp.where(valid, contrib, jnp.float32(0.0)))


def _wmse_partial_sums(pred2d, targ2d, threshold, high_weight, tile_rows):
    rows, lanes = pred2d.shape
    assert lanes == LANES and rows % SUBLANES == 0

    tile = min(_round_up(int(tile_rows), SUBLANES), rows)   # multiple of 8
    n_blocks = (rows + tile - 1) // tile
    spc = (n_blocks + NUM_CORES - 1) // NUM_CORES           # steps per core

    kernel = functools.partial(
        _wmse_kernel,
        threshold=float(threshold),
        high_weight=float(high_weight),
        rows=int(rows), tile=int(tile), spc=int(spc), n_blocks=int(n_blocks),
    )

    def in_map(c, i):
        # Clamp so the overhang step of the second core never DMAs OOB; its
        # (duplicate) data is fully masked out in-kernel.
        return (jnp.minimum(c * spc + i, n_blocks - 1), 0)

    in_bytes = rows * LANES * (pred2d.dtype.itemsize + targ2d.dtype.itemsize)
    cost = pl.CostEstimate(
        flops=6 * rows * LANES,
        transcendentals=0,
        bytes_accessed=in_bytes + NUM_CORES * SUBLANES * LANES * 4,
    )

    partials = pl.pallas_call(
        kernel,
        out_shape=jax.ShapeDtypeStruct((NUM_CORES, SUBLANES, LANES),
                                       jnp.float32),
        grid_spec=pltpu.PrefetchScalarGridSpec(
            num_scalar_prefetch=0,
            grid=(NUM_CORES, spc),
            in_specs=[
                pl.BlockSpec((tile, LANES), in_map),
                pl.BlockSpec((tile, LANES), in_map),
            ],
            out_specs=pl.BlockSpec((None, SUBLANES, LANES),
                                   lambda c, i: (c, 0, 0)),
        ),
        compiler_params=pltpu.CompilerParams(
            dimension_semantics=("parallel", "arbitrary"),
            vmem_limit_bytes=40 * 1024 * 1024,
        ),
        cost_estimate=cost,
    )(pred2d, targ2d)
    return partials


def weighted_mse_loss(pred, target, threshold=1.0, high_weight=3.0, *,
                      tile_rows=8192):
    assert pred.shape == target.shape, "pred/target shape mismatch"
    n_elems = pred.size

    pred_f = jnp.ravel(pred)
    targ_f = jnp.ravel(target)

    # Kernel handles the largest 1024-element-aligned prefix (zero-copy when
    # n_elems is already aligned, which is the common case).
    n_main = (n_elems // ALIGN) * ALIGN
    total = jnp.float32(0.0)

    if n_main > 0:
        rows = n_main // LANES
        p2 = pred_f[:n_main].reshape(rows, LANES)
        t2 = targ_f[:n_main].reshape(rows, LANES)
        partials = _wmse_partial_sums(p2, t2, threshold, high_weight,
                                      tile_rows)
        total = total + jnp.sum(partials)

    if n_main < n_elems:
        # Ragged tail (< 1024 elements): plain jnp, avoids a full-array pad.
        # TODO(synk): allow_input_fusion could fold a padded reshape into the
        # pallas_call inputs and remove this split entirely.
        tp = pred_f[n_main:].astype(jnp.float32)
        tt = targ_f[n_main:].astype(jnp.float32)
        w = jnp.where(tt > jnp.float32(threshold),
                      jnp.float32(high_weight), jnp.float32(1.0))
        total = total + jnp.sum(w * (tp - tt) ** 2)

    return total / jnp.float32(n_elems)


def weighted_mse_loss_ref(pred, target, threshold=1.0, high_weight=3.0):
    t = target.astype(jnp.float32)
    p = pred.astype(jnp.float32)
    w = jnp.where(t > threshold, jnp.float32(high_weight), jnp.float32(1.0))
    return (w * (p - t) ** 2).mean()


def _check(pred, target, **kw):
    out = jax.block_until_ready(weighted_mse_loss(pred, target, **{
        k: v for k, v in kw.items()}))
    ref = weighted_mse_loss_ref(pred, target,
                                threshold=kw.get("threshold", 1.0),
                                high_weight=kw.get("high_weight", 3.0))
    assert jnp.allclose(out, ref, rtol=1e-5, atol=1e-5), (out, ref)


if __name__ == "__main__":
    key = jax.random.PRNGKey(0)
    ks = jax.random.split(key, 8)

    # 1) NCHW prediction map, element count aligned to 1024 (single block).
    pred = jax.random.normal(ks[0], (2, 4, 16, 16), dtype=jnp.float32) * 2.0
    target = jax.random.normal(ks[1], (2, 4, 16, 16), dtype=jnp.float32) * 2.0
    _check(pred, target, threshold=1.0, high_weight=3.0)

    # 2) Ragged shape (1326 elems): kernel on the 1024-elem prefix + jnp tail.
    pred2 = jax.random.normal(ks[2], (2, 3, 17, 13), dtype=jnp.float32) * 2.0
    target2 = jax.random.normal(ks[3], (2, 3, 17, 13), dtype=jnp.float32) * 2.0
    _check(pred2, target2, threshold=1.0, high_weight=3.0)

    # 3) Multi-block + partial last block + both grid "cores" (small tile).
    pred3 = jax.random.normal(ks[4], (5, 32, 32), dtype=jnp.float32) * 2.0
    target3 = jax.random.normal(ks[5], (5, 32, 32), dtype=jnp.float32) * 2.0
    _check(pred3, target3, threshold=0.5, high_weight=4.0, tile_rows=16)

    # 4) bf16 inputs exercise the in-kernel cast path.
    pred4 = (jax.random.normal(ks[6], (4, 8, 32)) * 2.0).astype(jnp.bfloat16)
    target4 = (jax.random.normal(ks[7], (4, 8, 32)) * 2.0).astype(jnp.bfloat16)
    _check(pred4, target4, threshold=1.0, high_weight=3.0)

    print("KERNEL_OK")
</pallas_src>

<mosaic_0001>
module attributes {stable_mosaic.version = 11 : i64} {
  func.func @_wmse_kernel(%arg0: i32, %arg1: i32, %arg2: memref<16x128xf32, #tpu.memory_space<vmem>>, %arg3: memref<16x128xf32, #tpu.memory_space<vmem>>, %arg4: memref<1x8x128xf32, #tpu.memory_space<vmem>>) attributes {dimension_semantics = [#tpu.dimension_semantics<parallel>, #tpu.dimension_semantics<arbitrary>], iteration_bounds = array<i64: 2, 1>, scalar_prefetch = 0 : i64, scratch_operands = 0 : i64, tpu.core_type = #tpu.core_type<tc>, window_params = [{transform_indices = @transform_0, window_bounds = array<i64: 16, 128>}, {transform_indices = @transform_1, window_bounds = array<i64: 16, 128>}, {transform_indices = @transform_2, window_bounds = array<i64: 1, 8, 128>}]} {
    %c1_i32 = arith.constant 1 : i32
    %0 = arith.muli %arg0, %c1_i32 : i32
    %1 = arith.addi %0, %arg1 : i32
    %c0_i32 = arith.constant 0 : i32
    %2 = arith.cmpi eq, %arg1, %c0_i32 : i32
    %3 = arith.extui %2 : i1 to i32
    %c0_i32_0 = arith.constant 0 : i32
    %4 = arith.cmpi ne, %3, %c0_i32_0 : i32
    scf.if %4 {
      %cst_10 = arith.constant 0.000000e+00 : f32
      %21 = vector.broadcast %cst_10 : f32 to vector<8x128xf32>
      %c0_11 = arith.constant 0 : index
      %c0_12 = arith.constant 0 : index
      %c0_13 = arith.constant 0 : index
      %22 = vector.load %arg4[%c0_11, %c0_12, %c0_13] : memref<1x8x128xf32, #tpu.memory_space<vmem>>, vector<1x8x128xf32>
      %23 = vector.shape_cast %22 : vector<1x8x128xf32> to vector<8x128xf32>
      %24 = vector.shape_cast %21 : vector<8x128xf32> to vector<1x8x128xf32>
      tpu.vector_store %arg4[%c0_11, %c0_12, %c0_13], %24 {strides = array<i32>} : memref<1x8x128xf32, #tpu.memory_space<vmem>>, vector<1x8x128xf32>,
    } else {
    }
    %c0 = arith.constant 0 : index
    %c0_1 = arith.constant 0 : index
    %5 = vector.load %arg3[%c0, %c0_1] : memref<16x128xf32, #tpu.memory_space<vmem>>, vector<16x128xf32>
    %c0_2 = arith.constant 0 : index
    %c0_3 = arith.constant 0 : index
    %6 = vector.load %arg2[%c0_2, %c0_3] : memref<16x128xf32, #tpu.memory_space<vmem>>, vector<16x128xf32>
    %cst = arith.constant 1.000000e+00 : f32
    %7 = vector.broadcast %cst : f32 to vector<16x128xf32>
    %8 = arith.cmpf ogt, %5, %7 : vector<16x128xf32>
    %cst_4 = arith.constant 3.000000e+00 : f32
    %cst_5 = arith.constant 1.000000e+00 : f32
    %9 = vector.broadcast %cst_4 : f32 to vector<16x128xf32>
    %10 = vector.broadcast %cst_5 : f32 to vector<16x128xf32>
    %11 = arith.select %8, %9, %10 : vector<16x128xi1>, vector<16x128xf32>
    %12 = arith.subf %6, %5 : vector<16x128xf32>
    %13 = arith.mulf %11, %12 : vector<16x128xf32>
    %14 = arith.mulf %13, %12 : vector<16x128xf32>
    %c0_i32_6 = arith.constant 0 : i32
    %15 = arith.cmpi slt, %1, %c0_i32_6 : i32
    %16 = arith.extui %15 : i1 to i32
    %c0_i32_7 = arith.constant 0 : i32
    %17 = arith.cmpi ne, %16, %c0_i32_7 : i32
    scf.if %17 {
      %c0_10 = arith.constant 0 : index
      %c0_11 = arith.constant 0 : index
      %c0_12 = arith.constant 0 : index
      %21 = vector.load %arg4[%c0_10, %c0_11, %c0_12] : memref<1x8x128xf32, #tpu.memory_space<vmem>>, vector<1x8x128xf32>
      %22 = vector.shape_cast %21 : vector<1x8x128xf32> to vector<8x128xf32>
      %23 = vector.shape_cast %14 : vector<16x128xf32> to vector<2x8x128xf32>
      %cst_13 = arith.constant dense<0.000000e+00> : vector<8x128xf32>
      %24 = vector.multi_reduction <add>, %23, %cst_13 [0] : vector<2x8x128xf32> to vector<8x128xf32>
      %25 = arith.addf %22, %24 : vector<8x128xf32>
      %c0_14 = arith.constant 0 : index
      %c0_15 = arith.constant 0 : index
      %c0_16 = arith.constant 0 : index
      %26 = vector.load %arg4[%c0_14, %c0_15, %c0_16] : memref<1x8x128xf32, #tpu.memory_space<vmem>>, vector<1x8x128xf32>
      %27 = vector.shape_cast %26 : vector<1x8x128xf32> to vector<8x128xf32>
      %28 = vector.shape_cast %25 : vector<8x128xf32> to vector<1x8x128xf32>
      tpu.vector_store %arg4[%c0_14, %c0_15, %c0_16], %28 {strides = array<i32>} : memref<1x8x128xf32, #tpu.memory_space<vmem>>, vector<1x8x128xf32>,
    } else {
    }
    %c0_i32_8 = arith.constant 0 : i32
    %18 = arith.cmpi sge, %1, %c0_i32_8 : i32
    %19 = arith.extui %18 : i1 to i32
    %c0_i32_9 = arith.constant 0 : i32
    %20 = arith.cmpi ne, %19, %c0_i32_9 : i32
    scf.if %20 {
      %21 = tpu.iota {dimensions = array<i32: 0>} : vector<16x128xi32>
      %c16_i32 = arith.constant 16 : i32
      %22 = arith.muli %1, %c16_i32 : i32
      %23 = vector.broadcast %22 : i32 to vector<16x128xi32>
      %24 = arith.addi %23, %21 : vector<16x128xi32>
      %c16_i32_10 = arith.constant 16 : i32
      %25 = vector.broadcast %c16_i32_10 : i32 to vector<16x128xi32>
      %26 = arith.cmpi slt, %24, %25 : vector<16x128xi32>
      %c0_11 = arith.constant 0 : index
      %c0_12 = arith.constant 0 : index
      %c0_13 = arith.constant 0 : index
      %27 = vector.load %arg4[%c0_11, %c0_12, %c0_13] : memref<1x8x128xf32, #tpu.memory_space<vmem>>, vector<1x8x128xf32>
      %28 = vector.shape_cast %27 : vector<1x8x128xf32> to vector<8x128xf32>
      %cst_14 = arith.constant 0.000000e+00 : f32
      %29 = vector.broadcast %cst_14 : f32 to vector<16x128xf32>
      %30 = arith.select %26, %14, %29 : vector<16x128xi1>, vector<16x128xf32>
      %31 = vector.shape_cast %30 : vector<16x128xf32> to vector<2x8x128xf32>
      %cst_15 = arith.constant dense<0.000000e+00> : vector<8x128xf32>
      %32 = vector.multi_reduction <add>, %31, %cst_15 [0] : vector<2x8x128xf32> to vector<8x128xf32>
      %33 = arith.addf %28, %32 : vector<8x128xf32>
      %c0_16 = arith.constant 0 : index
      %c0_17 = arith.constant 0 : index
      %c0_18 = arith.constant 0 : index
      %34 = vector.load %arg4[%c0_16, %c0_17, %c0_18] : memref<1x8x128xf32, #tpu.memory_space<vmem>>, vector<1x8x128xf32>
      %35 = vector.shape_cast %34 : vector<1x8x128xf32> to vector<8x128xf32>
      %36 = vector.shape_cast %33 : vector<8x128xf32> to vector<1x8x128xf32>
      tpu.vector_store %arg4[%c0_16, %c0_17, %c0_18], %36 {strides = array<i32>} : memref<1x8x128xf32, #tpu.memory_space<vmem>>, vector<1x8x128xf32>,
    } else {
    }
    return
  }
  func.func @transform_0(%arg0: i32, %arg1: i32) -> (i32, i32) {
    %c1_i32 = arith.constant 1 : i32
    %0 = arith.muli %arg0, %c1_i32 : i32
    %1 = arith.addi %0, %arg1 : i32
    %c0_i32 = arith.constant 0 : i32
    %2 = arith.minsi %1, %c0_i32 : i32
    %c0_i32_0 = arith.constant 0 : i32
    %c0_i32_1 = arith.constant 0 : i32
    return %2, %c0_i32_0 : i32, i32
  }
  func.func @transform_1(%arg0: i32, %arg1: i32) -> (i32, i32) {
    %c1_i32 = arith.constant 1 : i32
    %0 = arith.muli %arg0, %c1_i32 : i32
    %1 = arith.addi %0, %arg1 : i32
    %c0_i32 = arith.constant 0 : i32
    %2 = arith.minsi %1, %c0_i32 : i32
    %c0_i32_0 = arith.constant 0 : i32
    %c0_i32_1 = arith.constant 0 : i32
    return %2, %c0_i32_0 : i32, i32
  }
  func.func @transform_2(%arg0: i32, %arg1: i32) -> (i32, i32, i32) {
    %c0_i32 = arith.constant 0 : i32
    %c0_i32_0 = arith.constant 0 : i32
    %c0_i32_1 = arith.constant 0 : i32
    return %arg0, %c0_i32, %c0_i32_0 : i32, i32, i32
  }
}

</mosaic_0001>

<bundles_post_ra>
// kernel: tpu_custom_call.1
= control target key start
LH: loop header
LB: loop body
LE: loop exit
PB: predicated region body
PF: predicated region fallthrough
CT: control target
= control target key end

     0   :  { %7 = vsyncpa [#allocation3], 0  ;;  %s899_s0 = inlined_call_operand.hbm [shape: f32[16,128], index: 0, kind: input, shape index: {}]   ;;  %s900_s1 = inlined_call_operand.hbm [shape: f32[16,128], index: 1, kind: input, shape index: {}]   ;;  %s901_s2 = inlined_call_operand.hbm [shape: f32[2,8,128], index: 2, kind: output, shape index: {}]  }
   0x1   :  { %9 = vsyncpa [#allocation3 + $0x1], 0 }
   0x2   :  { %10 = vsyncpa [#allocation6], 0 }
   0x3   :  { %12 = vsyncpa [#allocation6 + $0x1], 0 }
   0x4   :  { %13 = vsyncpa [#allocation4], 0 }
   0x5   :  { %15 = vsyncpa [#allocation4 + $0x1], 0  ;;  %s716_s9 = smov 0   ;;  %s718_s10 = smov 0  }
   0x6   :  { %s720_s11 = smov 0   ;;  %s722_s12 = smov 0  }
   0x7   :  { %s724_s13 = smov 0   ;;  %s726_s14 = smov 0  }
   0x8   :  { %s728_s15 = smov 0   ;;  %s730_s16 = smov 0  }
   0x9 LB: > { %s408_s17 = sadd.s32 4294967295, %s693_s16   ;;  %s409_s18 = sadd.s32 4294967294, %s693_s16   ;;  %s693_s16 = sphi %s730_s16, %s21_s16   ;;  %s689_s15 = sphi %s728_s15, %s913_s15   ;;  %s685_s14 = sphi %s726_s14, %s912_s14   ;;  %s681_s13 = sphi %s724_s13, %s889_s13   ;;  %s677_s12 = sphi %s722_s12, %s911_s12   ;;  %s673_s11 = sphi %s720_s11, %s910_s11   ;;  %s669_s10 = sphi %s718_s10, %s909_s10   ;;  %s665_s9 = sphi %s716_s9, %s908_s9  }
   0xa   : > { %s33_s19 = sadd.s32 1, %s689_s15  ;;  %p662_p1 = scmp.ne.s32.totalorder %s681_s13, 0 }
   0xb   : > { %p35_p0 = scmp.ge.s32.totalorder %s33_s19, 2  ;;  %p54_p2 = scmp.eq.s32.totalorder %s693_s16, 0 }
   0xc   : > { %p59_p3 = scmp.ne.s32.totalorder %s681_s13, %s677_s12  ;;  %p60_p5 = scmp.eq.s32.totalorder %s408_s17, 0 }
   0xd   : > { %s915_s19 = smov (%p35_p0, %s33_s19), 0  ;;  %p762_p4 = por %p662_p1, %p54_p2 }
   0xe   : > { %p766_p6 = por %p60_p5, %p59_p3  ;;  %s101_s22 = ssub.s32 %s689_s15, %s915_s19 }
   0xf   : > { %p102_p7 = scmp.eq.s32.totalorder %s101_s22, 0  ;;  %s104_s23 = sadd.s32 1, %s673_s11 }
  0x10   : > { %p114_p8 = scmp.ne.s32.totalorder %s673_s11, %s669_s10  ;;  %p115_p9 = scmp.eq.s32.totalorder %s408_s17, 1 }
  0x11   : > { %s774_s24 = scalar_select %p102_p7, %s673_s11, %s104_s23  }
  0x12   : > { %p120_p10 = scmp.ne.s32.totalorder %s669_s10, %s665_s9  ;;  %p121_p11 = scmp.eq.s32.totalorder %s409_s18, 1 }
  0x13   : > { %p780_p12 = por %p115_p9, %p114_p8  ;;  %p411_p13 = scmp.ge.s32.totalorder %s693_s16, 2 }
  0x14   : > { %p785_p0 = por %p121_p11, %p120_p10  ;;  %p448_p1 = scmp.lt.s32.totalorder %s693_s16, 2 }
  0x15   : > { %s154_s29 = sshll.u32 %s899_s0, 4  ;;  %s695_s30 = smov [#allocation2]   ;;  %s155_s29 = int_to_ptr.hbm [resolvable:$true] %s154_s29 }
  0x16   : > { %s156_s3 = sshll.u32 %s695_s30, 4  ;;  %p795_p2 = pnand %p448_p1, %p762_p4  ;;  %s157_s3 = int_to_ptr.vmem [resolvable:$true] %s156_s3 }
  0x17   : > { %p418_p3 = scmp.ge.s32.totalorder %s693_s16, 1  ;;  %p189_p5 = scmp.lt.s32.totalorder %s693_s16, 3 }
  0x18   : > { %s526_s5 = sshra.s32 %s155_s29, 4  ;;  %p530_p8 = pneg %p795_p2  ;;  %s527_s5 = int_to_ptr.hbm [resolvable:$true] %s526_s5 }
  0x19   : > { %s528_s6 = scalar_lea.hbm %s527_s5, 16  ;;  %s533_s12 = scalar_lea.hbm %s899_s0, 16 }
  0x1a   : > { %p529_p7 = scmp.ne.s32.totalorder %s527_s5, %s528_s6  ;;  %p535_p4 = scmp.lt.s32.totalorder %s533_s12, %s528_s6 }
  0x1c   : > { %p531_p9 = pnand %p530_p8, %p529_p7 }
  0x1e   : > { %p532_p10 = pneg %p531_p9 }
  0x20   : > { %p537_p11 = pnand %p535_p4, %p532_p10 }
  0x22   : > { %540 = shalt.err (!%p537_p11)
}
  0x23   : > { %s696_s17 = smov 128   ;;  %s697_s18 = smov 8  }
  0x24   : > { %440 = dma.hbm_to_vmem [thread:$0]  (!%p795_p2), %s155_s29, 256, %s157_s3, [#allocation3], %s696_s17, %s696_s17, %s697_s18  }
  0x25   : > { %p815_p1 = pnand %p418_p3, %p189_p5  ;;  %s179_s27 = sshll.u32 %s900_s1, 4  ;;  %s180_s27 = int_to_ptr.hbm [resolvable:$true] %s179_s27 }
  0x26   : > { %s698_s28 = smov [#allocation5]   ;;  %s556_s5 = sshra.s32 %s180_s27, 4  ;;  %s557_s5 = int_to_ptr.hbm [resolvable:$true] %s556_s5 }
  0x27   : > { %s181_s30 = sshll.u32 %s698_s28, 4  ;;  %s558_s6 = scalar_lea.hbm %s557_s5, 16  ;;  %s182_s30 = int_to_ptr.vmem [resolvable:$true] %s181_s30 }
  0x28   : > { %p559_p7 = scmp.ne.s32.totalorder %s557_s5, %s558_s6  ;;  %s563_s7 = scalar_lea.hbm %s900_s1, 16 }
  0x29   : > { %p565_p3 = scmp.lt.s32.totalorder %s563_s7, %s558_s6 }
  0x2a   : > { %p561_p9 = pnand %p559_p7, %p530_p8 }
  0x2c   : > { %p562_p10 = pneg %p561_p9 }
  0x2e   : > { %p567_p5 = pnand %p565_p3, %p562_p10 }
  0x30   : > { %570 = shalt.err (!%p567_p5)
}
  0x31   : > { %443 = dma.hbm_to_vmem [thread:$0]  (!%p795_p2), %s180_s27, 256, %s182_s30, [#allocation6], %s696_s17, %s696_s17, %s697_s18  }
  0x32   : > { %193 = sbr.rel (%p815_p1) target bundleno = 109 (0x6d), region = 28  ;;  %s195_s8 = sand.u32 (!%p815_p1), 1, %s681_s13  }
  0x33   : > { %s419_s12 = sshll.u32 (!%p815_p1), %s195_s8, 4  ;;  %s196_s22 = scalar_lea.sflag (!%p815_p1), [#allocation3], %s195_s8 }
  0x34   : > { %s199_s23 = scalar_lea.vmem (!%p815_p1), [#allocation2], %s419_s12 }
  0x37   : > { %651 = dma.done.wait (%p766_p6), %s196_s22, 256  }
  0x38   : > { %653 = vsyncadd (%p766_p6), %s196_s22, 4294967040  ;;  %s206_s28 = scalar_lea.sflag [#allocation6], %s195_s8  ;;  %s209_s5 = scalar_lea.vmem [#allocation5], %s419_s12 }
  0x39   : > { %655 = dma.done.wait (%p766_p6), %s206_s28, 256  }
  0x3a   : > { %657 = vsyncadd (%p766_p6), %s206_s28, 4294967040  ;;  %s233_s4 = sand.u32 1, %s669_s10   ;;  %v699_v0 = vmov 0.0   ;;  %v250_v1 = vld [vmem:[%s209_s5] sm:$0xff]  ;;  %v251_v2 = vld [vmem:[%s209_s5 + $0x8] sm:$0xff]  ;;  %v700_v6 = vmov 1.0  }
  0x3b   : > { %s421_s17 = sshll.u32 %s233_s4, 3  ;;  %v252_v3 = vld [vmem:[%s199_s23] sm:$0xff]  ;;  %v253_v4 = vld [vmem:[%s199_s23 + $0x8] sm:$0xff]  ;;  %vm254_vm0 = vcmp.gt.f32.partialorder %v250_v1, 1.0  ;;  %vm255_vm1 = vcmp.gt.f32.partialorder %v251_v2, 1.0  ;;  %p422_p6 = scmp.ge.s32.totalorder %s685_s14, 0 }
  0x3c   : > { %s844_s18 = scalar_lea.vmem [#allocation7], %s421_s17  ;;  %v258_v5 = vsub.f32 %v252_v3, %v250_v1  ;;  %v256_v7 = vsel %vm254_vm0, 3.0, %v700_v6  ;;  %v257_v8 = vsel %vm255_vm1, 3.0, %v700_v6  ;;  %v259_v9 = vsub.f32 %v253_v4, %v251_v2 }
  0x3d   : > { %249 = vst [vmem:[%s844_s18] sm:$0xff] %v699_v0  ;;  %267 = sbr.rel (%p422_p6) target bundleno = 72 (0x48), region = 44 }
  0x3e   : > { %v260_v10 = vmul.f32 %v258_v5, %v256_v7  ;;  %v261_v11 = vmul.f32 %v259_v9, %v257_v8 }
  0x40   : > { %v262_v12 = vmul.f32 %v260_v10, %v258_v5  ;;  %v263_v13 = vmul.f32 %v261_v11, %v259_v9 }
  0x42   : > { %v269_v15 = vadd.f32 %v263_v13, %v262_v12 }
  0x44   : > { %v268_v14 = vld [vmem:[%s844_s18] sm:$0xff] }
  0x45   : > { %v270_v16 = vadd.f32 %v269_v15, %v268_v14 }
  0x47   : > { %271 = vst [vmem:[%s844_s18] sm:$0xff] %v270_v16 }
  0x48 PF: > { %p423_p2 = scmp.lt.s32.totalorder %s685_s14, 0 }
  0x49   : > { %s424_s21 = sshll.u32 (!%p423_p2), %s685_s14, 4 }
  0x4a   : > { %275 = sbr.rel (%p423_p2) target bundleno = 94 (0x5e), region = 48 }
  0x4f   : > { %v276_v17 = vlaneseq  ;;  %v280_v18 = vstv %s424_s21  ;;  %v285_v24 = vld [vmem:[%s844_s18] sm:$0xff] }
  0x51   : > { %v277_v19 = vshrl.u32 %v276_v17, 7 }
  0x53   : > { %v278_v20 = vadd.s32 8, %v277_v19  ;;  %v281_v21 = vadd.s32 %v280_v18, %v277_v19 }
  0x55   : > { %v282_v22 = vadd.s32 %v280_v18, %v278_v20  ;;  %vm283_vm2 = vcmp.lt.s32.totalorder %v281_v21, 16 }
  0x56   : > { %v286_v23 = vsel %vm283_vm2, %v262_v12, 0.0 }
  0x57   : > { %vm284_vm3 = vcmp.lt.s32.totalorder %v282_v22, 16 }
  0x58   : > { %v287_v25 = vsel %vm284_vm3, %v263_v13, 0.0 }
  0x59   : > { %v288_v26 = vadd.f32 %v287_v25, %v286_v23 }
  0x5b   : > { %v289_v27 = vadd.f32 %v288_v26, %v285_v24 }
  0x5d   : > { %290 = vst [vmem:[%s844_s18] sm:$0xff] %v289_v27 }
  0x5e PF: > { %s426_s20 = sshll.u32 %s685_s14, 3  ;;  %s304_s29 = sshll.u32 %s844_s18, 4  ;;  %s305_s29 = int_to_ptr.vmem [resolvable:$true] %s304_s29 }
  0x5f   : > { %s302_s6 = scalar_lea.hbm %s901_s2, %s426_s20  ;;  %s292_s7 = scalar_lea.sflag [#allocation4], %s233_s4 }
  0x60   : > { %s306_s3 = sshll.u32 %s302_s6, 4  ;;  %s606_s14 = scalar_lea.hbm %s901_s2, 16  ;;  %s307_s3 = int_to_ptr.hbm [resolvable:$true] %s306_s3 }
  0x61   : > { %s600_s8 = sshra.s32 %s307_s3, 4  ;;  %s601_s8 = int_to_ptr.hbm [resolvable:$true] %s600_s8 }
  0x62   : > { %s602_s12 = scalar_lea.hbm %s601_s8, 8  ;;  %p607_p1 = scmp.lt.s32.totalorder %s601_s8, %s901_s2 }
  0x63   : > { %p603_p8 = scmp.ne.s32.totalorder %s601_s8, %s602_s12  ;;  %p608_p7 = scmp.lt.s32.totalorder %s606_s14, %s602_s12 }
  0x65   : > { %p604_p4 = pnand %p603_p8, %p780_p12  ;;  %p609_p9 = por %p608_p7, %p607_p1 }
  0x67   : > { %p605_p11 = pneg %p604_p4 }
  0x69   : > { %p610_p10 = pnand %p609_p9, %p605_p11 }
  0x6b   : > { %613 = shalt.err (!%p610_p10)
}
  0x6c   : > { %435 = dma.vmem_to_hbm [thread:$0]  (%p780_p12), %s305_s29, 128, %s307_s3, %s292_s7  }
  0x6d PF: > { %s318_s4 = sand.u32 1, %s665_s9   ;;  %p445_p3 = pnand %p411_p13, %p785_p0 }
  0x6e   : > { %s319_s17 = scalar_lea.sflag [#allocation4], %s318_s4 }
  0x6f   : > { %p446_p5 = pneg %p445_p3 }
  0x71   : > { %659 = dma.done.wait (%p446_p5), %s319_s17, 128  }
  0x72   : > { %661 = vsyncadd (%p446_p5), %s319_s17, 4294967168  ;;  %s21_s16 = sadd.s32 1, %s693_s16   ;;  %s908_s9 = smov %s669_s10 }
  0x73   : > { %p18_p6 = scmp.ge.s32.totalorder %s21_s16, 4   ;;  %s909_s10 = smov %s673_s11 }
  0x74   : > { %s910_s11 = smov %s774_s24  ;;  %s911_s12 = smov %s681_s13 }
  0x75   : > { %s889_s13 = smov 0   ;;  %s912_s14 = smov %s689_s15 }
  0x76   : > { %s913_s15 = smov %s915_s19  ;;  %20 = sbr.rel (!%p18_p6) target bundleno = 9 (0x9), region = 98 }
  0x7b   :  { %325 = vsyncpa [#allocation3], 1 }
  0x7c   :  { %327 = vsyncpa [#allocation3 + $0x1], 1 }
  0x7d   :  { %328 = vsyncpa [#allocation6], 1 }
  0x7e   :  { %330 = vsyncpa [#allocation6 + $0x1], 1 }
  0x7f   :  { %331 = vsyncpa [#allocation4], 1 }
  0x80   :  { %333 = vsyncpa [#allocation4 + $0x1], 1 }

</bundles_post_ra>
